<compile_context>
chip_gen: v5e
topology: v5e:2x2
jax: 0.10.0
libtpu: 0.0.40
codegen_flags: <defaults>
</compile_context>

<pallas_src>
import functools

import jax
import jax.numpy as jnp
from jax.experimental import pallas as pl
from jax.experimental.pallas import tpu as pltpu

EPS = 1e-5  # nn.BatchNorm2d default eps


def _round_up(x, m):
    return ((x + m - 1) // m) * m


def _largest_divisor_leq(n, cap):
    cap = max(1, min(n, cap))
    for g in range(cap, 0, -1):
        if n % g == 0:
            return g
    return 1


def _vmem_cap_bytes():
    try:
        return int(0.70 * pltpu.get_tpu_info().vmem_capacity_bytes)
    except Exception:
        return 64 << 20  # safe on all generations


def _conv_stats_kernel(xmat_ref, w_ref, conv_ref, sum_ref, sq_ref, *, tq, wo):
    """Pass 1: fused (width-im2col'd) conv via 4 kh-matmuls (MXU, bf16 in / f32 acc)
    + per-tile partial channel sum and sum-of-squares."""
    rows = tq * wo            # output rows in this tile (tq output image rows * Wo columns)
    half = (tq + 1) * wo      # rows per parity half of the input block (one halo q-row)
    conv = None
    for a in range(2):        # which of the two q-rows feeding an output row
        for b in range(2):    # padded-row parity
            kh = 2 * a + b    # conv kernel row
            lhs = xmat_ref[0, pl.ds(b * half + a * wo, rows), :]           # (rows, Kcp) bf16
            part = jnp.dot(lhs, w_ref[kh], preferred_element_type=jnp.float32)
            conv = part if conv is None else conv + part                   # (rows, Cp) f32
    conv_ref[0] = conv.astype(conv_ref.dtype)                              # bf16 intermediate
    s = jnp.sum(conv, axis=0, keepdims=True)                               # (1, Cp)
    sq = jnp.sum(conv * conv, axis=0, keepdims=True)                       # (1, Cp)
    sum_ref[0] = jnp.broadcast_to(s, sum_ref.shape[1:])
    sq_ref[0] = jnp.broadcast_to(sq, sq_ref.shape[1:])


def _bn_act_kernel(conv_ref, scale_ref, shift_ref, out_ref, *, act):
    """Pass 2: folded BatchNorm (y = conv*scale + shift) + activation, pure streaming."""
    y = conv_ref[...].astype(jnp.float32) * scale_ref[...] + shift_ref[...]
    if act == 'relu':
        y = jnp.maximum(y, 0.0)
    else:  # LeakyReLU(0.2)
        y = jnp.where(y > 0, y, 0.2 * y)
    out_ref[...] = y.astype(out_ref.dtype)


def block_forward(x, weight, gamma, beta, *, act='relu', use_dropout=False, down=True):
    """x: (N, Cin, H, W) f32, weight: (Cout, Cin, 4, 4) f32, gamma/beta: (Cout,) f32."""
    if not down:
        raise NotImplementedError  # TODO(synk): ConvTranspose2d path (down=False)
    N, Cin, H, W = x.shape
    Cout = weight.shape[0]
    Ho, Wo = H // 2, W // 2
    Hp = H + 2
    M = N * Ho * Wo                      # true element count per channel (for exact BN stats)
    Kc = 4 * Cin                         # width-im2col contraction size, ordered (kw, c)
    Kcp = _round_up(Kc, 128)
    Cp = _round_up(Cout, 128)
    cap = _vmem_cap_bytes()

    # ---- pass-1 tile size: tq output rows per tile (target ~1024 matmul rows) --------
    tq = min(Ho, max(1, 1024 // Wo))

    def est1(tq_):
        return (2 * (2 * (tq_ + 1) * Wo) * Kcp * 2    # double-buffered xmat tiles (bf16)
                + 2 * 4 * Kcp * Cp * 2                # weight block (bf16, double-buffered)
                + 2 * tq_ * Wo * Cp * 2               # double-buffered conv output tiles (bf16)
                + tq_ * Wo * Cp * 4                   # f32 accumulator value
                + tq_ * Wo * Kcp * 2                  # lhs staging
                + 4 * 8 * Cp * 4)                     # stats tiles

    while tq > 1 and est1(tq) > int(0.8 * cap):
        tq = max(1, tq // 2)
    nHb = -(-Ho // tq)                   # row blocks per image
    Ho_pad = nHb * tq
    NB = N * nHb                         # pass-1 grid size
    rows = tq * Wo
    half = (tq + 1) * Wo

    # ---- wrapper: width-only im2col (bf16) + row-parity split + halo row blocks -------
    # xrow[n, r, wo, kw*Cin + c] = xpad[n, c, r, 2*wo + kw]
    xp = jnp.pad(x, ((0, 0), (0, 0), (1, 1), (1, 1)), mode='reflect').astype(jnp.bfloat16)
    cols = [xp[:, :, :, kw: kw + 2 * Wo: 2] for kw in range(4)]        # each (N, Cin, Hp, Wo)
    xrow = jnp.stack(cols, axis=0).transpose(1, 3, 4, 0, 2)            # (N, Hp, Wo, 4, Cin)
    xrow = xrow.reshape(N, Hp, Wo, Kc)
    # parity split: xq[n, b, q] = xrow[n, 2*q + b]   (padded row = 2*(ho+a)+b, kh = 2a+b)
    xq = xrow.reshape(N, Hp // 2, 2, Wo, Kc).transpose(0, 2, 1, 3, 4)  # (N, 2, Ho+1, Wo, Kc)
    xq = jnp.pad(xq, ((0, 0), (0, 0), (0, Ho_pad - Ho), (0, 0), (0, Kcp - Kc)))
    # halo-carrying row blocks of tq output rows (tq+1 q-rows each)
    blk = [xq[:, :, hb * tq: hb * tq + tq + 1] for hb in range(nHb)]   # (N,2,tq+1,Wo,Kcp)
    xmat = jnp.stack(blk, axis=1).reshape(NB, 2 * half, Kcp)

    # weights: wk[kh, kw*Cin + c, o] = weight[o, c, kh, kw]
    wk = weight.transpose(2, 3, 1, 0).reshape(4, Kc, Cout).astype(jnp.bfloat16)
    wk = jnp.pad(wk, ((0, 0), (0, Kcp - Kc), (0, Cp - Cout)))
    gamma_p = jnp.pad(gamma.astype(jnp.float32), (0, Cp - Cout), constant_values=1.0)
    beta_p = jnp.pad(beta.astype(jnp.float32), (0, Cp - Cout))

    # ---- pass 1: fused conv (MXU) + per-tile partial channel stats ("parallel") -------
    vmem1 = int(min(max(2 * est1(tq), 32 << 20), cap))
    conv, psum, psq = pl.pallas_call(
        functools.partial(_conv_stats_kernel, tq=tq, wo=Wo),
        out_shape=(jax.ShapeDtypeStruct((NB, rows, Cp), jnp.bfloat16),
                   jax.ShapeDtypeStruct((NB, 8, Cp), jnp.float32),
                   jax.ShapeDtypeStruct((NB, 8, Cp), jnp.float32)),
        grid=(NB,),
        in_specs=[
            pl.BlockSpec((1, 2 * half, Kcp), lambda i: (i, 0, 0)),
            pl.BlockSpec((4, Kcp, Cp), lambda i: (0, 0, 0)),
        ],
        out_specs=(
            pl.BlockSpec((1, rows, Cp), lambda i: (i, 0, 0)),
            pl.BlockSpec((1, 8, Cp), lambda i: (i, 0, 0)),
            pl.BlockSpec((1, 8, Cp), lambda i: (i, 0, 0)),
        ),
        compiler_params=pltpu.CompilerParams(
            dimension_semantics=("parallel",),
            vmem_limit_bytes=vmem1),
    )(xmat, wk)

    # ---- fold BN into per-channel scale/shift (tiny (NB, Cp) reduce, plain JAX) --------
    inv_m = 1.0 / M
    csum = jnp.sum(psum[:, 0, :], axis=0)
    csq = jnp.sum(psq[:, 0, :], axis=0)
    mean = csum * inv_m
    var = jnp.maximum(csq * inv_m - mean * mean, 0.0)
    scale = gamma_p * jax.lax.rsqrt(var + EPS)
    shift = beta_p - mean * scale

    # ---- pass 2: normalize + activation (large streaming tiles, lane-dense) ------------
    max_rows2 = min(8192, max(rows, int(0.8 * cap) // (12 * Cp)))
    g = _largest_divisor_leq(NB, max(1, max_rows2 // rows))   # pass-1 tiles grouped per step
    est2 = 12 * g * rows * Cp + 8 * Cp * 4
    vmem2 = int(min(max(2 * est2, 32 << 20), cap))
    out3 = pl.pallas_call(
        functools.partial(_bn_act_kernel, act=act),
        out_shape=jax.ShapeDtypeStruct((NB, rows, Cp), jnp.float32),
        grid=(NB // g,),
        in_specs=[
            pl.BlockSpec((g, rows, Cp), lambda j: (j, 0, 0)),
            pl.BlockSpec((1, Cp), lambda j: (0, 0)),
            pl.BlockSpec((1, Cp), lambda j: (0, 0)),
        ],
        out_specs=pl.BlockSpec((g, rows, Cp), lambda j: (j, 0, 0)),
        compiler_params=pltpu.CompilerParams(
            dimension_semantics=("parallel",),
            vmem_limit_bytes=vmem2),
    )(conv, scale.reshape(1, Cp), shift.reshape(1, Cp))

    # rows are ordered (n, hb, t, wo) -> (N, Ho_pad, Wo, Cp); drop padding, back to NCHW.
    y = out3.reshape(N, Ho_pad, Wo, Cp)[:, :Ho, :, :Cout].transpose(0, 3, 1, 2)
    # use_dropout=False -> identity (Dropout is identity in eval mode anyway).
    # TODO(synk): stochastic Dropout(0.5) via pltpu.prng_* for use_dropout=True training.
    return y


def _reference(x, weight, gamma, beta):
    """Pure-JAX f32 reference of the same forward pass."""
    xp = jnp.pad(x, ((0, 0), (0, 0), (1, 1), (1, 1)), mode='reflect')
    conv = jax.lax.conv_general_dilated(
        xp, weight, window_strides=(2, 2), padding='VALID',
        dimension_numbers=('NCHW', 'OIHW', 'NCHW'))
    mean = conv.mean(axis=(0, 2, 3), keepdims=True)
    var = ((conv - mean) ** 2).mean(axis=(0, 2, 3), keepdims=True)
    y = (conv - mean) * jax.lax.rsqrt(var + EPS) \
        * gamma.reshape(1, -1, 1, 1) + beta.reshape(1, -1, 1, 1)
    return jnp.maximum(y, 0.0)


if __name__ == "__main__":
    # Small deterministic example: N=2, Cin=4, Cout=8, H=W=16 -> output (2, 8, 8, 8)
    N, Cin, Cout, H, W = 2, 4, 8, 16, 16
    key = jax.random.PRNGKey(0)
    kx, kw, kg, kb = jax.random.split(key, 4)

    x = jax.random.normal(kx, (N, Cin, H, W), dtype=jnp.float32)
    weight = 0.1 * jax.random.normal(kw, (Cout, Cin, 4, 4), dtype=jnp.float32)
    gamma = 1.0 + 0.1 * jax.random.normal(kg, (Cout,), dtype=jnp.float32)
    beta = 0.1 * jax.random.normal(kb, (Cout,), dtype=jnp.float32)

    out = block_forward(x, weight, gamma, beta, act='relu', use_dropout=False, down=True)
    out = jax.block_until_ready(out)

    ref = jax.block_until_ready(_reference(x, weight, gamma, beta))
    assert out.shape == (N, Cout, H // 2, W // 2), out.shape
    # bf16 MXU inputs and bf16 conv intermediate (f32 accumulation / f32 stats) loosen the
    # tolerance vs the pure-f32 reference.
    max_err = float(jnp.max(jnp.abs(out - ref)))
    assert max_err < 5e-2, f"mismatch vs reference: {max_err}"

    print("KERNEL_OK")
</pallas_src>

<mosaic_0001>
module attributes {stable_mosaic.version = 11 : i64} {
  func.func @_conv_stats_kernel(%arg0: i32, %arg1: memref<1x144x128xbf16, #tpu.memory_space<vmem>>, %arg2: memref<4x128x128xbf16, #tpu.memory_space<vmem>>, %arg3: memref<1x64x128xbf16, #tpu.memory_space<vmem>>, %arg4: memref<1x8x128xf32, #tpu.memory_space<vmem>>, %arg5: memref<1x8x128xf32, #tpu.memory_space<vmem>>) attributes {dimension_semantics = [#tpu.dimension_semantics<parallel>], iteration_bounds = array<i64: 2>, scalar_prefetch = 0 : i64, scratch_operands = 0 : i64, tpu.core_type = #tpu.core_type<tc>, window_params = [{transform_indices = @transform_0, window_bounds = array<i64: 1, 144, 128>}, {pipeline_mode = #tpu.pipeline_mode<synchronous>, transform_indices = @transform_1, window_bounds = array<i64: 4, 128, 128>}, {transform_indices = @transform_2, window_bounds = array<i64: 1, 64, 128>}, {transform_indices = @transform_3, window_bounds = array<i64: 1, 8, 128>}, {transform_indices = @transform_4, window_bounds = array<i64: 1, 8, 128>}]} {
    %c0 = arith.constant 0 : index
    %c0_0 = arith.constant 0 : index
    %c0_1 = arith.constant 0 : index
    %0 = vector.load %arg1[%c0, %c0_0, %c0_1] : memref<1x144x128xbf16, #tpu.memory_space<vmem>>, vector<1x64x128xbf16>
    %1 = vector.shape_cast %0 : vector<1x64x128xbf16> to vector<64x128xbf16>
    %c0_2 = arith.constant 0 : index
    %c0_3 = arith.constant 0 : index
    %c0_4 = arith.constant 0 : index
    %2 = vector.load %arg2[%c0_2, %c0_3, %c0_4] : memref<4x128x128xbf16, #tpu.memory_space<vmem>>, vector<1x128x128xbf16>
    %3 = vector.shape_cast %2 : vector<1x128x128xbf16> to vector<128x128xbf16>
    %cst = arith.constant dense<0.000000e+00> : vector<64x128xf32>
    %4 = tpu.matmul %1, %3, %cst {dimension_numbers = #tpu.dot_dimension_numbers<[1], [0], [0], [1], [0, 0, 1, 1], [], []>} : vector<64x128xbf16>, vector<128x128xbf16>, vector<64x128xf32> -> vector<64x128xf32>
    %c0_5 = arith.constant 0 : index
    %c72 = arith.constant 72 : index
    %c0_6 = arith.constant 0 : index
    %5 = vector.load %arg1[%c0_5, %c72, %c0_6] : memref<1x144x128xbf16, #tpu.memory_space<vmem>>, vector<1x64x128xbf16>
    %6 = vector.shape_cast %5 : vector<1x64x128xbf16> to vector<64x128xbf16>
    %c1 = arith.constant 1 : index
    %c0_7 = arith.constant 0 : index
    %c0_8 = arith.constant 0 : index
    %7 = vector.load %arg2[%c1, %c0_7, %c0_8] : memref<4x128x128xbf16, #tpu.memory_space<vmem>>, vector<1x128x128xbf16>
    %8 = vector.shape_cast %7 : vector<1x128x128xbf16> to vector<128x128xbf16>
    %cst_9 = arith.constant dense<0.000000e+00> : vector<64x128xf32>
    %9 = tpu.matmul %6, %8, %cst_9 {dimension_numbers = #tpu.dot_dimension_numbers<[1], [0], [0], [1], [0, 0, 1, 1], [], []>} : vector<64x128xbf16>, vector<128x128xbf16>, vector<64x128xf32> -> vector<64x128xf32>
    %10 = arith.addf %4, %9 : vector<64x128xf32>
    %c0_10 = arith.constant 0 : index
    %c8 = arith.constant 8 : index
    %c0_11 = arith.constant 0 : index
    %11 = vector.load %arg1[%c0_10, %c8, %c0_11] : memref<1x144x128xbf16, #tpu.memory_space<vmem>>, vector<1x64x128xbf16>
    %12 = vector.shape_cast %11 : vector<1x64x128xbf16> to vector<64x128xbf16>
    %c2 = arith.constant 2 : index
    %c0_12 = arith.constant 0 : index
    %c0_13 = arith.constant 0 : index
    %13 = vector.load %arg2[%c2, %c0_12, %c0_13] : memref<4x128x128xbf16, #tpu.memory_space<vmem>>, vector<1x128x128xbf16>
    %14 = vector.shape_cast %13 : vector<1x128x128xbf16> to vector<128x128xbf16>
    %cst_14 = arith.constant dense<0.000000e+00> : vector<64x128xf32>
    %15 = tpu.matmul %12, %14, %cst_14 {dimension_numbers = #tpu.dot_dimension_numbers<[1], [0], [0], [1], [0, 0, 1, 1], [], []>} : vector<64x128xbf16>, vector<128x128xbf16>, vector<64x128xf32> -> vector<64x128xf32>
    %16 = arith.addf %10, %15 : vector<64x128xf32>
    %c0_15 = arith.constant 0 : index
    %c80 = arith.constant 80 : index
    %c0_16 = arith.constant 0 : index
    %17 = vector.load %arg1[%c0_15, %c80, %c0_16] : memref<1x144x128xbf16, #tpu.memory_space<vmem>>, vector<1x64x128xbf16>
    %18 = vector.shape_cast %17 : vector<1x64x128xbf16> to vector<64x128xbf16>
    %c3 = arith.constant 3 : index
    %c0_17 = arith.constant 0 : index
    %c0_18 = arith.constant 0 : index
    %19 = vector.load %arg2[%c3, %c0_17, %c0_18] : memref<4x128x128xbf16, #tpu.memory_space<vmem>>, vector<1x128x128xbf16>
    %20 = vector.shape_cast %19 : vector<1x128x128xbf16> to vector<128x128xbf16>
    %cst_19 = arith.constant dense<0.000000e+00> : vector<64x128xf32>
    %21 = tpu.matmul %18, %20, %cst_19 {dimension_numbers = #tpu.dot_dimension_numbers<[1], [0], [0], [1], [0, 0, 1, 1], [], []>} : vector<64x128xbf16>, vector<128x128xbf16>, vector<64x128xf32> -> vector<64x128xf32>
    %22 = arith.addf %16, %21 : vector<64x128xf32>
    %23 = arith.truncf %22 : vector<64x128xf32> to vector<64x128xbf16>
    %c0_20 = arith.constant 0 : index
    %c0_21 = arith.constant 0 : index
    %c0_22 = arith.constant 0 : index
    %24 = vector.load %arg3[%c0_20, %c0_21, %c0_22] : memref<1x64x128xbf16, #tpu.memory_space<vmem>>, vector<1x64x128xbf16>
    %25 = vector.shape_cast %24 : vector<1x64x128xbf16> to vector<64x128xbf16>
    %26 = vector.shape_cast %23 : vector<64x128xbf16> to vector<1x64x128xbf16>
    tpu.vector_store %arg3[%c0_20, %c0_21, %c0_22], %26 {strides = array<i32>} : memref<1x64x128xbf16, #tpu.memory_space<vmem>>, vector<1x64x128xbf16>,
    %cst_23 = arith.constant dense<0.000000e+00> : vector<128xf32>
    %27 = vector.multi_reduction <add>, %22, %cst_23 [0] : vector<64x128xf32> to vector<128xf32>
    %28 = vector.shape_cast %27 : vector<128xf32> to vector<1x128xf32>
    %29 = arith.mulf %22, %22 : vector<64x128xf32>
    %cst_24 = arith.constant dense<0.000000e+00> : vector<128xf32>
    %30 = vector.multi_reduction <add>, %29, %cst_24 [0] : vector<64x128xf32> to vector<128xf32>
    %31 = vector.shape_cast %30 : vector<128xf32> to vector<1x128xf32>
    %32 = vector.shape_cast %28 : vector<1x128xf32> to vector<1x128xf32>
    %33 = vector.broadcast %32 : vector<1x128xf32> to vector<8x128xf32>
    %c0_25 = arith.constant 0 : index
    %c0_26 = arith.constant 0 : index
    %c0_27 = arith.constant 0 : index
    %34 = vector.load %arg4[%c0_25, %c0_26, %c0_27] : memref<1x8x128xf32, #tpu.memory_space<vmem>>, vector<1x8x128xf32>
    %35 = vector.shape_cast %34 : vector<1x8x128xf32> to vector<8x128xf32>
    %36 = vector.shape_cast %33 : vector<8x128xf32> to vector<1x8x128xf32>
    tpu.vector_store %arg4[%c0_25, %c0_26, %c0_27], %36 {strides = array<i32>} : memref<1x8x128xf32, #tpu.memory_space<vmem>>, vector<1x8x128xf32>,
    %37 = vector.shape_cast %31 : vector<1x128xf32> to vector<1x128xf32>
    %38 = vector.broadcast %37 : vector<1x128xf32> to vector<8x128xf32>
    %c0_28 = arith.constant 0 : index
    %c0_29 = arith.constant 0 : index
    %c0_30 = arith.constant 0 : index
    %39 = vector.load %arg5[%c0_28, %c0_29, %c0_30] : memref<1x8x128xf32, #tpu.memory_space<vmem>>, vector<1x8x128xf32>
    %40 = vector.shape_cast %39 : vector<1x8x128xf32> to vector<8x128xf32>
    %41 = vector.shape_cast %38 : vector<8x128xf32> to vector<1x8x128xf32>
    tpu.vector_store %arg5[%c0_28, %c0_29, %c0_30], %41 {strides = array<i32>} : memref<1x8x128xf32, #tpu.memory_space<vmem>>, vector<1x8x128xf32>,
    return
  }
  func.func @transform_0(%arg0: i32) -> (i32, i32, i32) {
    %c0_i32 = arith.constant 0 : i32
    %c0_i32_0 = arith.constant 0 : i32
    %c0_i32_1 = arith.constant 0 : i32
    return %arg0, %c0_i32, %c0_i32_0 : i32, i32, i32
  }
  func.func @transform_1(%arg0: i32) -> (i32, i32, i32) {
    %c0_i32 = arith.constant 0 : i32
    %c0_i32_0 = arith.constant 0 : i32
    %c0_i32_1 = arith.constant 0 : i32
    %c0_i32_2 = arith.constant 0 : i32
    return %c0_i32, %c0_i32_0, %c0_i32_1 : i32, i32, i32
  }
  func.func @transform_2(%arg0: i32) -> (i32, i32, i32) {
    %c0_i32 = arith.constant 0 : i32
    %c0_i32_0 = arith.constant 0 : i32
    %c0_i32_1 = arith.constant 0 : i32
    return %arg0, %c0_i32, %c0_i32_0 : i32, i32, i32
  }
  func.func @transform_3(%arg0: i32) -> (i32, i32, i32) {
    %c0_i32 = arith.constant 0 : i32
    %c0_i32_0 = arith.constant 0 : i32
    %c0_i32_1 = arith.constant 0 : i32
    return %arg0, %c0_i32, %c0_i32_0 : i32, i32, i32
  }
  func.func @transform_4(%arg0: i32) -> (i32, i32, i32) {
    %c0_i32 = arith.constant 0 : i32
    %c0_i32_0 = arith.constant 0 : i32
    %c0_i32_1 = arith.constant 0 : i32
    return %arg0, %c0_i32, %c0_i32_0 : i32, i32, i32
  }
}

</mosaic_0001>

<bundles_post_ra>
// kernel: tpu_custom_call.1
= control target key start
LH: loop header
LB: loop body
LE: loop exit
PB: predicated region body
PF: predicated region fallthrough
CT: control target
= control target key end

     0   :  { %10 = vsyncpa [#allocation3], 0  ;;  %s1820_s0 = inlined_call_operand.hbm [shape: bf16[2,144,128], index: 0, kind: input, shape index: {}]   ;;  %s1821_s1 = inlined_call_operand.hbm [shape: bf16[4,128,128], index: 1, kind: input, shape index: {}]   ;;  %s1822_s2 = inlined_call_operand.hbm [shape: bf16[2,64,128], index: 2, kind: output, shape index: {0}]   ;;  %s1823_s3 = inlined_call_operand.hbm [shape: f32[2,8,128], index: 3, kind: output, shape index: {1}]   ;;  %s1824_s4 = inlined_call_operand.hbm [shape: f32[2,8,128], index: 4, kind: output, shape index: {2}]  }
   0x1   :  { %12 = vsyncpa [#allocation3 + $0x1], 0 }
   0x2   :  { %13 = vsyncpa [#allocation6], 0 }
   0x3   :  { %14 = vsyncpa [#allocation4], 0 }
   0x4   :  { %16 = vsyncpa [#allocation4 + $0x1], 0 }
   0x5   :  { %17 = vsyncpa [#allocation9], 0 }
   0x6   :  { %19 = vsyncpa [#allocation9 + $0x1], 0  ;;  %s1603_s15 = smov 0   ;;  %s1605_s16 = smov 0  }
   0x7   :  { %s1607_s17 = smov 0   ;;  %s1609_s18 = smov 0  }
   0x8 LB: > { %s1624_s19 = sadd.s32 4294967295, %s1571_s18   ;;  %s1825_s20 = sadd.s32 4294967294, %s1571_s18   ;;  %s1571_s18 = sphi %s1609_s18, %s1840_s18   ;;  %s1567_s17 = sphi %s1607_s17, %s1839_s17   ;;  %s1563_s16 = sphi %s1605_s16, %s1838_s16   ;;  %s1559_s15 = sphi %s1603_s15, %s1837_s15  }
   0x9   : > { %p45_p0 = scmp.ne.s32.totalorder %s1563_s16, %s1559_s15  ;;  %p46_p1 = scmp.eq.s32.totalorder %s1624_s19, 0 }
   0xa   : > { %p90_p2 = scmp.eq.s32.totalorder %s1624_s19, 1  ;;  %p96_p3 = scmp.eq.s32.totalorder %s1825_s20, 1 }
   0xb   : > { %p1635_p4 = por %p46_p1, %p45_p0  ;;  %p1025_p5 = scmp.ge.s32.totalorder %s1571_s18, 1 }
   0xc   : > { %p1640_p6 = por %p96_p3, %p45_p0  ;;  %p155_p7 = scmp.lt.s32.totalorder %s1571_s18, 3 }
   0xd   : > { %s166_s25 = sshll.u32 %s1821_s1, 4  ;;  %s1573_s27 = smov [#allocation5]   ;;  %s167_s25 = int_to_ptr.hbm [resolvable:$true] %s166_s25 }
   0xe   : > { %p1648_p8 = pnand %p1025_p5, %p155_p7  ;;  %s168_s28 = sshll.u32 %s1573_s27, 4  ;;  %s169_s28 = int_to_ptr.vmem [resolvable:$true] %s168_s28 }
   0xf   : > { %s1658_s29 = sadd.s32 1, %s1571_s18   ;;  %s1826_s30 = smov 64  }
  0x10   : > { %p1322_p9 = pneg %p1648_p8  ;;  %s1827_s5 = smov 4  }
  0x11   : > { %s29_s6 = ssub.s32 %s1571_s18, %s1658_s29  ;;  %s32_s7 = sadd.s32 1, %s1567_s17 }
  0x12   : > { %p1323_p10 = pnand %p1322_p9, %p46_p1  ;;  %p30_p12 = scmp.eq.s32.totalorder %s29_s6, 0 }
  0x13   : > { %p39_p13 = scmp.ne.s32.totalorder %s1567_s17, %s1563_s16  ;;  %p40_p0 = scmp.eq.s32.totalorder %s1571_s18, 0 }
  0x14   : > { %1325 = dma.hbm_to_vmem [thread:$0]  (!%p1323_p10), %s167_s25, 4096, %s169_s28, [#allocation6], %s1826_s30, %s1826_s30, %s1827_s5  }
  0x15   : > { %p1341_p3 = scmp.lt.s32.totalorder %s1571_s18, 2  ;;  %p41_p5 = por %p40_p0, %p39_p13 }
  0x16   : > { %s1671_s8 = scalar_select %p30_p12, %s1567_s17, %s32_s7  }
  0x17   : > { %p1675_p7 = por %p90_p2, %p39_p13  ;;  %s182_s10 = sand.u32 1, %s1567_s17  }
  0x18   : > { %s1308_s11 = smul.u32 72, %s1571_s18  ;;  %p1684_p9 = pnand %p1341_p3, %p41_p5 }
  0x19   : > { %s1307_s12 = smul.u32 72, %s182_s10  ;;  %s183_s6 = scalar_lea.sflag [#allocation3], %s182_s10 }
  0x1a   : > { %s191_s23 = scalar_lea.hbm %s1820_s0, %s1308_s11  ;;  %p1415_p10 = pneg %p1684_p9 }
  0x1b   : > { %s192_s25 = sshll.u32 %s191_s23, 4  ;;  %s186_s27 = scalar_lea.vmem [#allocation2], %s1307_s12  ;;  %s193_s25 = int_to_ptr.hbm [resolvable:$true] %s192_s25 }
  0x1c   : > { %s194_s28 = sshll.u32 %s186_s27, 4  ;;  %s1411_s7 = sshra.s32 %s193_s25, 4  ;;  %s195_s28 = int_to_ptr.vmem [resolvable:$true] %s194_s28  ;;  %s1412_s7 = int_to_ptr.hbm [resolvable:$true] %s1411_s7 }
  0x1d   : > { %s1413_s20 = scalar_lea.hbm %s1412_s7, 72  ;;  %s1418_s14 = scalar_lea.hbm %s1820_s0, 144 }
  0x1e   : > { %p1414_p2 = scmp.ne.s32.totalorder %s1412_s7, %s1413_s20  ;;  %p1419_p0 = scmp.lt.s32.totalorder %s1412_s7, %s1820_s0 }
  0x1f   : > { %p1420_p3 = scmp.lt.s32.totalorder %s1418_s14, %s1413_s20 }
  0x20   : > { %p1416_p12 = pnand %p1415_p10, %p1414_p2 }
  0x21   : > { %p1421_p5 = por %p1420_p3, %p1419_p0 }
  0x22   : > { %p1417_p13 = pneg %p1416_p12 }
  0x24   : > { %p1422_p11 = pnand %p1421_p5, %p1417_p13 }
  0x26   : > { %1425 = shalt.err (!%p1422_p11)
}
  0x27   : > { %s1833_s10 = smov 4   ;;  %s1834_s12 = smov 64  }
  0x28   : > { %1329 = dma.hbm_to_vmem [thread:$0]  (!%p1684_p9), %s193_s25, 1152, %s195_s28, %s183_s6, %s1834_s12, %s1834_s12, %s1833_s10  }
  0x29   : > { %206 = sbr.rel (%p1648_p8) target bundleno = 310 (0x136), region = 28  ;;  %s1704_s23 = sand.u32 (!%p1648_p8), 1, %s1563_s16  }
  0x2a   : > { %s1309_s30 = smul.u32 (!%p1648_p8), 72, %s1704_s23  ;;  %s209_s20 = scalar_lea.sflag (!%p1648_p8), [#allocation3], %s1704_s23 }
  0x2c   : > { %s1708_s5 = scalar_lea.vmem (!%p1648_p8), [#allocation2], %s1309_s30 }
  0x2e   : > { %1542 = dma.done.wait (%p1635_p4), %s209_s20, 1152  }
  0x2f   : > { %1544 = vsyncadd (%p1635_p4), %s209_s20, 4294966144 }
  0x30   : > { %1546 = dma.done.wait (%p46_p1), [#allocation6], 4096  }
  0x31   : > { %1548 = vsyncadd (%p46_p1), [#allocation6], 4294963200  ;;  %v1258_v0 = vld [vmem:[#allocation5 + $0x78] sm:$0xff]  ;;  %v1257_v4 = vld [vmem:[#allocation5 + $0x70] sm:$0xff]  ;;  %s1031_s21 = sshll.u32 %s1704_s23, 5  ;;  %s1283_s24 = sshll.u32 %s1624_s19, 5 }
  0x32   : > { %v1246_v1 = vld [vmem:[#allocation5 + $0x38] sm:$0xff]  ;;  %374 = vmatpush.bf16.msra.mxu0 %v1258_v0  ;;  %v1245_v5 = vld [vmem:[#allocation5 + $0x30] sm:$0xff]  ;;  %v1256_v8 = vld [vmem:[#allocation5 + $0x68] sm:$0xff]  ;;  %s1735_s26 = scalar_lea.vmem [#allocation7], %s1031_s21  ;;  %s846_s28 = scalar_lea.hbm %s1822_s2, %s1283_s24 }
  0x33   : > { %v1270_v2 = vld [vmem:[#allocation5 + $0xb8] sm:$0xff]  ;;  %475 = vmatpush.bf16.msra.mxu1 %v1246_v1  ;;  %v1269_v6 = vld [vmem:[#allocation5 + $0xb0] sm:$0xff]  ;;  %v1244_v9 = vld [vmem:[#allocation5 + $0x28] sm:$0xff]  ;;  %s847_s6 = sshll.u32 %s1735_s26, 4  ;;  %s849_s7 = sshll.u32 %s846_s28, 4  ;;  %s1745_s6 = int_to_ptr.vmem [resolvable:$true] %s847_s6  ;;  %s850_s7 = int_to_ptr.hbm [resolvable:$true] %s849_s7 }
  0x34   : > { %v1282_v3 = vld [vmem:[#allocation5 + $0xf8] sm:$0xff]  ;;  %601 = vmatpush.bf16.msra.mxu2 %v1270_v2  ;;  %v1281_v7 = vld [vmem:[#allocation5 + $0xf0] sm:$0xff]  ;;  %v1268_v10 = vld [vmem:[#allocation5 + $0xa8] sm:$0xff]  ;;  %s1032_s11 = sshll.u32 %s1704_s23, 3  ;;  %s1231_s13 = sshll.u32 %s1624_s19, 3 }
  0x35   : > { %735 = vmatpush.bf16.msra.mxu3 %v1282_v3  ;;  %v1280_v11 = vld [vmem:[#allocation5 + $0xe8] sm:$0xff]  ;;  %v1255_v12 = vld [vmem:[#allocation5 + $0x60] sm:$0xff]  ;;  %v1254_v16 = vld [vmem:[#allocation5 + $0x58] sm:$0xff]  ;;  %s825_s14 = scalar_lea.sflag [#allocation4], %s1704_s23  ;;  %s1455_s10 = sshra.s32 %s850_s7, 4  ;;  %s1456_s10 = int_to_ptr.hbm [resolvable:$true] %s1455_s10 }
  0x36   : > { %375 = vmatpush.bf16.msra.mxu0 %v1257_v4  ;;  %v1243_v13 = vld [vmem:[#allocation5 + $0x20] sm:$0xff]  ;;  %v1242_v17 = vld [vmem:[#allocation5 + $0x18] sm:$0xff]  ;;  %v1253_v20 = vld [vmem:[#allocation5 + $0x50] sm:$0xff]  ;;  %s1457_s12 = scalar_lea.hbm %s1456_s10, 32  ;;  %p1462_p11 = scmp.lt.s32.totalorder %s1456_s10, %s1822_s2 }
  0x37   : > { %476 = vmatpush.bf16.msra.mxu1 %v1245_v5  ;;  %v1267_v14 = vld [vmem:[#allocation5 + $0xa0] sm:$0xff]  ;;  %v1266_v18 = vld [vmem:[#allocation5 + $0x98] sm:$0xff]  ;;  %v1241_v21 = vld [vmem:[#allocation5 + $0x10] sm:$0xff]  ;;  %p1458_p1 = scmp.ne.s32.totalorder %s1456_s10, %s1457_s12 }
  0x38   : > { %602 = vmatpush.bf16.msra.mxu2 %v1269_v6  ;;  %v1279_v15 = vld [vmem:[#allocation5 + $0xe0] sm:$0xff]  ;;  %v1278_v19 = vld [vmem:[#allocation5 + $0xd8] sm:$0xff]  ;;  %v1265_v22 = vld [vmem:[#allocation5 + $0x90] sm:$0xff] }
  0x39   : > { %736 = vmatpush.bf16.msra.mxu3 %v1281_v7  ;;  %v1277_v23 = vld [vmem:[#allocation5 + $0xd0] sm:$0xff]  ;;  %v1252_v24 = vld [vmem:[#allocation5 + $0x48] sm:$0xff]  ;;  %v1251_v28 = vld [vmem:[#allocation5 + $0x40] sm:$0xff]  ;;  %p1459_p4 = pnand %p1458_p1, %p1675_p7 }
  0x3a   : > { %376 = vmatpush.bf16.msra.mxu0 %v1256_v8  ;;  %v1240_v25 = vld [vmem:[#allocation5 + $0x8] sm:$0xff]  ;;  %v1239_v29 = vld [vmem:[#allocation5] sm:$0xff]  ;;  %v1235_v33 = vld [vmem:[%s1708_s5] sm:$0xff] }
  0x3b   : > { %477 = vmatpush.bf16.msra.mxu1 %v1244_v9  ;;  %v1264_v26 = vld [vmem:[#allocation5 + $0x88] sm:$0xff]  ;;  %v1263_v30 = vld [vmem:[#allocation5 + $0x80] sm:$0xff]  ;;  %v1274_v47 = vld [vmem:[%s1708_s5 + $0x40] sm:$0xff]  ;;  %p1460_p8 = pneg %p1459_p4 }
  0x3c   : > { %603 = vmatpush.bf16.msra.mxu2 %v1268_v10  ;;  %v1276_v27 = vld [vmem:[#allocation5 + $0xc8] sm:$0xff]  ;;  %v1275_v31 = vld [vmem:[#allocation5 + $0xc0] sm:$0xff] }
  0x3d   : > { %737 = vmatpush.bf16.msra.mxu3 %v1280_v11  ;;  %v1247_v32 = vld [vmem:[%s1708_s5 + $0x24] sm:$0xff]  ;;  %v1248_v36 = vld [vmem:[%s1708_s5 + $0x2c] sm:$0xff]  ;;  %v1249_v40 = vld [vmem:[%s1708_s5 + $0x34] sm:$0xff] }
  0x3e   : > { %377 = vmatpush.bf16.msra.mxu0 %v1255_v12  ;;  %v1259_v34 = vld [vmem:[%s1708_s5 + $0x4] sm:$0xff]  ;;  %v1260_v38 = vld [vmem:[%s1708_s5 + $0xc] sm:$0xff]  ;;  %v1261_v42 = vld [vmem:[%s1708_s5 + $0x14] sm:$0xff] }
  0x3f   : > { %478 = vmatpush.bf16.msra.mxu1 %v1243_v13  ;;  %v1271_v35 = vld [vmem:[%s1708_s5 + $0x28] sm:$0xff]  ;;  %v1272_v39 = vld [vmem:[%s1708_s5 + $0x30] sm:$0xff]  ;;  %v1273_v43 = vld [vmem:[%s1708_s5 + $0x38] sm:$0xff] }
  0x40   : > { %604 = vmatpush.bf16.msra.mxu2 %v1267_v14  ;;  %v1236_v37 = vld [vmem:[%s1708_s5 + $0x8] sm:$0xff]  ;;  %v1237_v41 = vld [vmem:[%s1708_s5 + $0x10] sm:$0xff]  ;;  %v1250_v44 = vld [vmem:[%s1708_s5 + $0x3c] sm:$0xff] }
  0x41   : > { %738 = vmatpush.bf16.msra.mxu3 %v1279_v15  ;;  %v1238_v45 = vld [vmem:[%s1708_s5 + $0x18] sm:$0xff] }
  0x42   : > { %378 = vmatpush.bf16.msra.mxu0 %v1254_v16  ;;  %v1262_v46 = vld [vmem:[%s1708_s5 + $0x1c] sm:$0xff]  ;;  %s1461_s5 = scalar_lea.hbm %s1822_s2, 64 }
  0x43   : > { %479 = vmatpush.bf16.msra.mxu1 %v1242_v17  ;;  %p1463_p9 = scmp.lt.s32.totalorder %s1461_s5, %s1457_s12 }
  0x44   : > { %605 = vmatpush.bf16.msra.mxu2 %v1266_v18 }
  0x45   : > { %739 = vmatpush.bf16.msra.mxu3 %v1278_v19  ;;  %p1464_p2 = por %p1463_p9, %p1462_p11 }
  0x46   : > { %379 = vmatpush.bf16.msra.mxu0 %v1253_v20 }
  0x47   : > { %480 = vmatpush.bf16.msra.mxu1 %v1241_v21  ;;  %p1465_p10 = pnand %p1464_p2, %p1460_p8 }
  0x48   : > { %606 = vmatpush.bf16.msra.mxu2 %v1265_v22 }
  0x49   : > { %740 = vmatpush.bf16.msra.mxu3 %v1277_v23 }
  0x4a   : > { %380 = vmatpush.bf16.msra.mxu0 %v1252_v24 }
  0x4b   : > { %481 = vmatpush.bf16.msra.mxu1 %v1240_v25 }
  0x4c   : > { %607 = vmatpush.bf16.msra.mxu2 %v1264_v26 }
  0x4d   : > { %741 = vmatpush.bf16.msra.mxu3 %v1276_v27 }
  0x4e   : > { %381 = vmatpush.bf16.msra.mxu0 %v1251_v28 }
  0x4f   : > { %482 = vmatpush.bf16.msra.mxu1 %v1239_v29 }
  0x50   : > { %608 = vmatpush.bf16.msra.mxu2 %v1263_v30 }
  0x51   : > { %742 = vmatpush.bf16.msra.mxu3 %v1275_v31  ;;  %382 = vmatmul.bf16.vlgmr.msra.gmra.mxu0 %v1247_v32 }
  0x52   : > { %483 = vmatmul.bf16.vlgmr.msra.gmra.mxu1 %v1235_v33 }
  0x53   : > { %609 = vmatmul.bf16.vlgmr.msra.gmra.mxu2 %v1259_v34 }
  0x54   : > { %743 = vmatmul.bf16.vlgmr.msra.gmra.mxu3 %v1271_v35 }
  0x61   : > { %387 = vmatmul.bf16.gmra.mxu0 %v1248_v36 }
  0x62   : > { %488 = vmatmul.bf16.gmra.mxu1 %v1236_v37 }
  0x63   : > { %614 = vmatmul.bf16.gmra.mxu2 %v1260_v38 }
  0x64   : > { %748 = vmatmul.bf16.gmra.mxu3 %v1272_v39 }
  0x71   : > { %392 = vmatmul.bf16.gmra.mxu0 %v1249_v40 }
  0x72   : > { %493 = vmatmul.bf16.gmra.mxu1 %v1237_v41 }
  0x73   : > { %619 = vmatmul.bf16.gmra.mxu2 %v1261_v42 }
  0x74   : > { %753 = vmatmul.bf16.gmra.mxu3 %v1273_v43 }
  0x81   : > { %397 = vmatmul.bf16.gmra.mxu0 %v1250_v44 }
  0x82   : > { %498 = vmatmul.bf16.gmra.mxu1 %v1238_v45 }
  0x83   : > { %624 = vmatmul.bf16.gmra.mxu2 %v1262_v46 }
  0x84   : > { %758 = vmatmul.bf16.gmra.mxu3 %v1274_v47 }
  0xce   : > { %v383_v48 = vpop.f32.mrf.mxu0 }
  0xcf   : > { %v484_v49 = vpop.f32.mrf.mxu1 }
  0xd0   : > { %v485_v54 = vadd.f32 %v484_v49, %v383_v48 }
  0xd6   : > { %v610_v50 = vpop.f32.mrf.mxu2  ;;  %v385_v52 = vpop.f32.mrf.mxu0 }
  0xd7   : > { %v744_v51 = vpop.f32.mrf.mxu3  ;;  %v486_v53 = vpop.f32.mrf.mxu1  ;;  %v630_v55 = vadd.f32 %v610_v50, %v485_v54 }
  0xd8   : > { %v487_v56 = vadd.f32 %v486_v53, %v385_v52 }
  0xd9   : > { %v764_v62 = vadd.f32 %v744_v51, %v630_v55 }
  0xdb   : > { %v801_v35 = vmul.f32 %v764_v62, %v764_v62 }
  0xde   : > { %v612_v57 = vpop.f32.mrf.mxu2  ;;  %v388_v60 = vpop.f32.mrf.mxu0 }
  0xdf   : > { %v746_v58 = vpop.f32.mrf.mxu3  ;;  %v631_v59 = vadd.f32 %v612_v57, %v487_v56  ;;  %v489_v61 = vpop.f32.mrf.mxu1 }
  0xe0   : > { %v490_v5 = vadd.f32 %v489_v61, %v388_v60 }
  0xe1   : > { %v765_v63 = vadd.f32 %v746_v58, %v631_v59 }
  0xe3   : > { %v1287_v0 = vpack.c.bf16 %v765_v63, %v764_v62  ;;  %v802_v32 = vmul.f32 %v765_v63, %v765_v63  ;;  %v788_v36 = vadd.f32 %v765_v63, %v764_v62 }
  0xe5   : > { %1288 = vst [vmem:[%s1735_s26] sm:$0xff] %v1287_v0   ;;  %v809_v39 = vadd.f32 %v802_v32, %v801_v35 }
  0xe6   : > { %v615_v1 = vpop.f32.mrf.mxu2  ;;  %v390_v3 = vpop.f32.mrf.mxu0 }
  0xe7   : > { %v749_v2 = vpop.f32.mrf.mxu3  ;;  %v491_v4 = vpop.f32.mrf.mxu1  ;;  %v632_v6 = vadd.f32 %v615_v1, %v490_v5 }
  0xe8   : > { %v492_v7 = vadd.f32 %v491_v4, %v390_v3 }
  0xe9   : > { %v766_v13 = vadd.f32 %v749_v2, %v632_v6 }
  0xeb   : > { %v803_v37 = vmul.f32 %v766_v13, %v766_v13  ;;  %v789_v40 = vadd.f32 %v788_v36, %v766_v13 }
  0xed   : > { %v810_v44 = vadd.f32 %v809_v39, %v803_v37 }
  0xee   : > { %v617_v8 = vpop.f32.mrf.mxu2  ;;  %v393_v11 = vpop.f32.mrf.mxu0 }
  0xef   : > { %v751_v9 = vpop.f32.mrf.mxu3  ;;  %v633_v10 = vadd.f32 %v617_v8, %v492_v7  ;;  %v494_v12 = vpop.f32.mrf.mxu1 }
  0xf0   : > { %v495_v20 = vadd.f32 %v494_v12, %v393_v11 }
  0xf1   : > { %v767_v14 = vadd.f32 %v751_v9, %v633_v10 }
  0xf3   : > { %v1292_v15 = vpack.c.bf16 %v767_v14, %v766_v13  ;;  %v804_v41 = vmul.f32 %v767_v14, %v767_v14  ;;  %v790_v45 = vadd.f32 %v789_v40, %v767_v14 }
  0xf5   : > { %1304 = vst [vmem:[%s1735_s26 + $0x8] sm:$0xff] %v1292_v15   ;;  %v811_v48 = vadd.f32 %v810_v44, %v804_v41 }
  0xf6   : > { %v620_v16 = vpop.f32.mrf.mxu2  ;;  %v395_v18 = vpop.f32.mrf.mxu0 }
  0xf7   : > { %v754_v17 = vpop.f32.mrf.mxu3  ;;  %v496_v19 = vpop.f32.mrf.mxu1  ;;  %v634_v21 = vadd.f32 %v620_v16, %v495_v20 }
  0xf8   : > { %v497_v22 = vadd.f32 %v496_v19, %v395_v18 }
  0xf9   : > { %v768_v28 = vadd.f32 %v754_v17, %v634_v21 }
  0xfb   : > { %v805_v46 = vmul.f32 %v768_v28, %v768_v28  ;;  %v791_v49 = vadd.f32 %v790_v45, %v768_v28 }
  0xfd   : > { %v812_v53 = vadd.f32 %v811_v48, %v805_v46 }
  0xfe   : > { %v622_v23 = vpop.f32.mrf.mxu2  ;;  %v398_v26 = vpop.f32.mrf.mxu0 }
  0xff   : > { %v756_v24 = vpop.f32.mrf.mxu3  ;;  %v635_v25 = vadd.f32 %v622_v23, %v497_v22  ;;  %v499_v27 = vpop.f32.mrf.mxu1 }
 0x100   : > { %v500_v31 = vadd.f32 %v499_v27, %v398_v26 }
 0x101   : > { %v769_v29 = vadd.f32 %v756_v24, %v635_v25 }
 0x103   : > { %v1297_v30 = vpack.c.bf16 %v769_v29, %v768_v28  ;;  %v806_v50 = vmul.f32 %v769_v29, %v769_v29  ;;  %v792_v54 = vadd.f32 %v791_v49, %v769_v29 }
 0x105   : > { %1305 = vst [vmem:[%s1735_s26 + $0x10] sm:$0xff] %v1297_v30   ;;  %v813_v58 = vadd.f32 %v812_v53, %v806_v50 }
 0x106   : > { %v625_v33 = vpop.f32.mrf.mxu2  ;;  %v400_v42 = vpop.f32.mrf.mxu0 }
 0x107   : > { %v759_v34 = vpop.f32.mrf.mxu3  ;;  %v636_v38 = vadd.f32 %v625_v33, %v500_v31  ;;  %v501_v43 = vpop.f32.mrf.mxu1 }
 0x108   : > { %v502_v51 = vadd.f32 %v501_v43, %v400_v42 }
 0x109   : > { %v770_v47 = vadd.f32 %v759_v34, %v636_v38 }
 0x10b   : > { %v807_v55 = vmul.f32 %v770_v47, %v770_v47  ;;  %v793_v59 = vadd.f32 %v792_v54, %v770_v47 }
 0x10d   : > { %v814_v61 = vadd.f32 %v813_v58, %v807_v55 }
 0x10e   : > { %v627_v52 = vpop.f32.mrf.mxu2 }
 0x10f   : > { %v637_v56 = vadd.f32 %v627_v52, %v502_v51  ;;  %v761_v57 = vpop.f32.mrf.mxu3 }
 0x111   : > { %v771_v60 = vadd.f32 %v761_v57, %v637_v56 }
 0x113   : > { %v1302_v62 = vpack.c.bf16 %v771_v60, %v770_v47  ;;  %v794_v63 = vadd.f32 %v793_v59, %v771_v60  ;;  %v808_v0 = vmul.f32 %v771_v60, %v771_v60 }
 0x115   : > { %1306 = vst [vmem:[%s1735_s26 + $0x18] sm:$0xff] %v1302_v62   ;;  %v795_v1 = vrot.slane %v794_v63, 4  ;;  %v815_v2 = vadd.f32 %v814_v61, %v808_v0 }
 0x116   : > { %1468 = shalt.err (!%p1465_p10)
}
 0x117   : > { %s1576_s26 = smov 64   ;;  %s1577_s25 = smov 4   ;;  %v796_v3 = vadd.f32 %v795_v1, %v794_v63  ;;  %v816_v4 = vrot.slane %v815_v2, 4 }
 0x118   : > { %1316 = dma.vmem_to_hbm [thread:$0]  (%p1675_p7), %s1745_s6, 512, %s850_s7, %s825_s14, %s1576_s26, %s1576_s26, %s1577_s25  }
 0x119   : > { %v797_v5 = vrot.slane %v796_v3, 2  ;;  %v817_v6 = vadd.f32 %v816_v4, %v815_v2  ;;  %s862_s10 = scalar_lea.hbm %s1823_s3, %s1231_s13  ;;  %s829_s12 = sand.u32 1, %s1624_s19  }
 0x11a   : > { %s876_s5 = scalar_lea.hbm %s1824_s4, %s1231_s13  ;;  %s245_s21 = scalar_lea.vmem [#allocation8], %s1032_s11 }
 0x11b   : > { %v798_v7 = vadd.f32 %v797_v5, %v796_v3  ;;  %v818_v8 = vrot.slane %v817_v6, 2  ;;  %s864_s24 = sshll.u32 %s245_s21, 4  ;;  %s866_s6 = sshll.u32 %s862_s10, 4  ;;  %s865_s24 = int_to_ptr.vmem [resolvable:$true] %s864_s24  ;;  %s867_s6 = int_to_ptr.hbm [resolvable:$true] %s866_s6 }
 0x11c   : > { %s880_s7 = sshll.u32 %s876_s5, 4  ;;  %s252_s14 = scalar_lea.vmem [#allocation10], %s1032_s11  ;;  %s1775_s7 = int_to_ptr.hbm [resolvable:$true] %s880_s7 }
 0x11d   : > { %v799_v9 = vrot.slane %v798_v7, 1  ;;  %v819_v10 = vadd.f32 %v818_v8, %v817_v6  ;;  %s878_s26 = sshll.u32 %s252_s14, 4  ;;  %s830_s19 = scalar_lea.sflag [#allocation9], %s829_s12  ;;  %s1773_s26 = int_to_ptr.vmem [resolvable:$true] %s878_s26 }
 0x11e   : > { %s1483_s13 = sshra.s32 %s867_s6, 4  ;;  %s1489_s27 = scalar_lea.hbm %s1823_s3, 16  ;;  %s1484_s13 = int_to_ptr.hbm [resolvable:$true] %s1483_s13 }
 0x11f   : > { %v820_v11 = vrot.slane %v819_v10, 1  ;;  %v800_v12 = vadd.f32 %v799_v9, %v798_v7  ;;  %s1485_s25 = scalar_lea.hbm %s1484_s13, 8  ;;  %p1490_p3 = scmp.lt.s32.totalorder %s1484_s13, %s1823_s3 }
 0x120   : > { %p1486_p12 = scmp.ne.s32.totalorder %s1484_s13, %s1485_s25  ;;  %p1491_p5 = scmp.lt.s32.totalorder %s1489_s27, %s1485_s25 }
 0x121   : > { %822 = vst [vmem:[%s245_s21] sm:$0xff] %v800_v12  ;;  %v821_v13 = vadd.f32 %v820_v11, %v819_v10 }
 0x122   : > { %p1487_p13 = pnand %p1486_p12, %p1675_p7  ;;  %p1492_p1 = por %p1491_p5, %p1490_p3 }
 0x124   : > { %p1488_p0 = pneg %p1487_p13 }
 0x126   : > { %p1493_p4 = pnand %p1492_p1, %p1488_p0 }
 0x128   : > { %1496 = shalt.err (!%p1493_p4)
}
 0x129   : > { %1317 = dma.vmem_to_hbm [thread:$0]  (%p1675_p7), %s865_s24, 128, %s867_s6, %s830_s19   ;;  %823 = vst [vmem:[%s252_s14] sm:$0xff] %v821_v13 }
 0x12a   : > { %s1511_s12 = sshra.s32 %s1775_s7, 4  ;;  %s1517_s21 = scalar_lea.hbm %s1824_s4, 16  ;;  %s1512_s12 = int_to_ptr.hbm [resolvable:$true] %s1511_s12 }
 0x12b   : > { %s1513_s30 = scalar_lea.hbm %s1512_s12, 8  ;;  %p1518_p2 = scmp.lt.s32.totalorder %s1512_s12, %s1824_s4 }
 0x12c   : > { %p1514_p8 = scmp.ne.s32.totalorder %s1512_s12, %s1513_s30  ;;  %p1519_p10 = scmp.lt.s32.totalorder %s1517_s21, %s1513_s30 }
 0x12e   : > { %p1515_p11 = pnand %p1514_p8, %p1675_p7  ;;  %p1520_p12 = por %p1519_p10, %p1518_p2 }
 0x130   : > { %p1516_p9 = pneg %p1515_p11 }
 0x132   : > { %p1521_p13 = pnand %p1520_p12, %p1516_p9 }
 0x134   : > { %1524 = shalt.err (!%p1521_p13)
}
 0x135   : > { %1318 = dma.vmem_to_hbm [thread:$0]  (%p1675_p7), %s1773_s26, 128, %s1775_s7, %s830_s19  }
 0x136 PF: > { %s892_s24 = sand.u32 1, %s1559_s15   ;;  %p1835_p0 = scmp.ge.s32.totalorder %s1571_s18, 2 }
 0x137   : > { %s893_s6 = scalar_lea.sflag [#allocation4], %s892_s24 }
 0x138   : > { %p1331_p3 = pnand %p1835_p0, %p1640_p6 }
 0x13a   : > { %p1332_p5 = pneg %p1331_p3 }
 0x13c   : > { %1550 = dma.done.wait (%p1332_p5), %s893_s6, 512  }
 0x13d   : > { %1552 = vsyncadd (%p1332_p5), %s893_s6, 4294966784  ;;  %s1836_s14 = sadd.s32 4294967294, %s1571_s18  }
 0x13e   : > { %s902_s23 = sand.u32 1, %s1836_s14  }
 0x13f   : > { %s903_s11 = scalar_lea.sflag [#allocation9], %s902_s23 }
 0x140   : > { %1554 = dma.done.wait (%p1332_p5), %s903_s11, 256  }
 0x141   : > { %1556 = vsyncadd (%p1332_p5), %s903_s11, 4294967040  ;;  %p22_p7 = scmp.ge.s32.totalorder %s1658_s29, 4   ;;  %s1837_s15 = smov %s1563_s16 }
 0x142   : > { %s1838_s16 = smov %s1567_s17  ;;  %s1839_s17 = smov %s1671_s8 }
 0x143   : > { %s1840_s18 = smov %s1658_s29  ;;  %24 = sbr.rel (!%p22_p7) target bundleno = 8 (0x8), region = 112 }
 0x148   :  { %919 = vsyncpa [#allocation3], 1 }
 0x149   :  { %921 = vsyncpa [#allocation3 + $0x1], 1 }
 0x14a   :  { %922 = vsyncpa [#allocation6], 1 }
 0x14b   :  { %923 = vsyncpa [#allocation4], 1 }
 0x14c   :  { %925 = vsyncpa [#allocation4 + $0x1], 1 }
 0x14d   :  { %926 = vsyncpa [#allocation9], 1 }
 0x14e   :  { %928 = vsyncpa [#allocation9 + $0x1], 1 }

</bundles_post_ra>
